<compile_context>
chip_gen: v7x
topology: tpu7x:2x2x1
jax: 0.10.0
libtpu: 0.0.40
codegen_flags: <defaults>
</compile_context>

<pallas_src>
import jax
import jax.numpy as jnp
from jax.experimental import pallas as pl
from jax.experimental.pallas import tpu as pltpu

EPS = 1e-5

# Packed small-parameter buffer layout: (12, 256) f32, zero-padded on lanes.
#   rows 0-1: gamma1 / beta1 (64)     rows 2-3: gamma2 / beta2 (128)
#   rows 4-5: gamma3 / beta3 (256)    rows 6-7: gamma4 / beta4 (64)
#   rows 8-9: gamma5 / beta5 (32)
#   row 10 : fc6 weight as a (1,32) row    row 11: fc6 bias (1 value)
_PACK_ROWS = 12
_PACK_LANES = 256
_W6_ROW = 10
_B6_ROW = 11


def mlp_kernel(x_ref, w1, w2, w3, w4, w5, small_ref, out_ref):
    B = x_ref.shape[0]
    inv_b = 1.0 / B  # static

    def bn_relu_layer(h, w_ref, row, f):
        # MXU matmul: bf16 inputs, f32 accumulation.  Linear bias omitted:
        # it is exactly cancelled by batch-statistic BatchNorm.
        z = jnp.dot(h.astype(jnp.bfloat16), w_ref[...],
                    preferred_element_type=jnp.float32)
        # One-pass batch statistics in f32; axis-0 reductions are sublane
        # reduces (XLU), off the VALU critical path.
        s = jnp.sum(z, axis=0, keepdims=True)
        ss = jnp.sum(z * z, axis=0, keepdims=True)
        mean = s * inv_b
        var = jnp.maximum(ss * inv_b - mean * mean, 0.0)   # biased variance
        # Static slices into the packed small-parameter buffer.
        g = small_ref[row:row + 1, 0:f]
        bt = small_ref[row + 1:row + 2, 0:f]
        # Fold the BN affine into one FMA over [B, f]; scale/shift are [1, f].
        scale = g * jax.lax.rsqrt(var + EPS)
        shift = bt - mean * scale
        return jnp.maximum(z * scale + shift, 0.0)

    h = x_ref[...].astype(jnp.float32)
    h = bn_relu_layer(h, w1, 0, 64)
    h = bn_relu_layer(h, w2, 2, 128)
    h = bn_relu_layer(h, w3, 4, 256)
    h = bn_relu_layer(h, w4, 6, 64)
    h = bn_relu_layer(h, w5, 8, 32)

    # fc6: [B,32] x [32,1] is a degenerate MXU shape -> VPU multiply + lane
    # reduce, in f32.
    w6_row = small_ref[_W6_ROW:_W6_ROW + 1, 0:32]
    b6 = small_ref[_B6_ROW:_B6_ROW + 1, 0:1]
    z = jnp.sum(h * w6_row, axis=-1, keepdims=True) + b6
    out_ref[...] = jax.nn.sigmoid(z)


def init_params(key, input_size):
    """Deterministic PyTorch-style init.  Weights stored as (in, out).
    Returns the full 22-parameter list (incl. fc biases and BN affine) to stay
    faithful to the PyTorch module; the wrapper packs/drops what it needs.
    BN gamma/beta are randomized (rather than torch's 1/0 defaults) so the
    correctness check actually exercises the packed-parameter indexing."""
    sizes = (input_size, 64, 128, 256, 64, 32, 1)
    params = []
    for i in range(6):
        fan_in, fan_out = sizes[i], sizes[i + 1]
        key, kw, kb = jax.random.split(key, 3)
        bound = 1.0 / (fan_in ** 0.5)
        w = jax.random.uniform(kw, (fan_in, fan_out), jnp.float32, -bound, bound)
        b = jax.random.uniform(kb, (1, fan_out), jnp.float32, -bound, bound)
        params += [w, b]
        if i < 5:  # BatchNorm after the first 5 linears: gamma, beta
            key, kg, kt = jax.random.split(key, 3)
            params += [jax.random.uniform(kg, (1, fan_out), jnp.float32, 0.5, 1.5),
                       jax.random.uniform(kt, (1, fan_out), jnp.float32, -0.5, 0.5)]
    return params


def _pack_small_params(gb_pairs, w6, b6):
    """Stack gamma/beta for 5 BN layers, the fc6 weight row and the fc6 bias
    into one lane-dense (12, 256) f32 buffer (zero-padded on lanes)."""
    small = jnp.zeros((_PACK_ROWS, _PACK_LANES), jnp.float32)
    rows = []
    for g, bt in gb_pairs:
        rows += [g.reshape(-1), bt.reshape(-1)]
    rows += [w6.reshape(-1), b6.reshape(-1)]
    for i, v in enumerate(rows):
        small = small.at[i, : v.shape[0]].set(v)
    return small


def mlp_forward(x, params):
    (w1, b1, g1, bt1, w2, b2, g2, bt2, w3, b3, g3, bt3,
     w4, b4, g4, bt4, w5, b5, g5, bt5, w6, b6) = params
    del b1, b2, b3, b4, b5  # exactly cancelled by batch-stat BatchNorm
    B = x.shape[0]

    small = _pack_small_params(
        [(g1, bt1), (g2, bt2), (g3, bt3), (g4, bt4), (g5, bt5)], w6, b6)
    # bf16 weights: halves weight HBM->VMEM traffic; native MXU dtype on
    # v6e/v7x.  Accumulation and all elementwise work remain f32.
    w_bf16 = [w.astype(jnp.bfloat16) for w in (w1, w2, w3, w4, w5)]

    flat_inputs = [x, *w_bf16, small]   # 7 inputs total

    out = pl.pallas_call(
        mlp_kernel,
        out_shape=jax.ShapeDtypeStruct((B, 1), jnp.float32),
        in_specs=[pl.BlockSpec(memory_space=pltpu.MemorySpace.VMEM)] * len(flat_inputs),
        out_specs=pl.BlockSpec(memory_space=pltpu.MemorySpace.VMEM),
    )(*flat_inputs)
    # torch `.squeeze()` removes all size-1 dims
    return jnp.squeeze(out)


def mlp_reference_f32(x, params):
    """Pure-JAX reference faithful to the PyTorch module (f32 weights, biases
    included, two-pass biased variance, training-mode BatchNorm)."""
    (w1, b1, g1, bt1, w2, b2, g2, bt2, w3, b3, g3, bt3,
     w4, b4, g4, bt4, w5, b5, g5, bt5, w6, b6) = params

    def layer(h, w, b, g, bt):
        z = h @ w + b
        mean = jnp.mean(z, axis=0, keepdims=True)
        var = jnp.mean(jnp.square(z - mean), axis=0, keepdims=True)
        zn = (z - mean) / jnp.sqrt(var + EPS)
        return jnp.maximum(zn * g + bt, 0.0)

    h = x
    h = layer(h, w1, b1, g1, bt1)
    h = layer(h, w2, b2, g2, bt2)
    h = layer(h, w3, b3, g3, bt3)
    h = layer(h, w4, b4, g4, bt4)
    h = layer(h, w5, b5, g5, bt5)
    z = h @ w6 + b6
    return jnp.squeeze(jax.nn.sigmoid(z))


def mlp_reference_kernel_math(x, params):
    """Pure-JAX mirror of the kernel math (bias drop, one-pass variance,
    bf16 matmul inputs, f32 elsewhere) — tight check of the Pallas translation
    (parameter packing / slicing / layer plumbing)."""
    (w1, _b1, g1, bt1, w2, _b2, g2, bt2, w3, _b3, g3, bt3,
     w4, _b4, g4, bt4, w5, _b5, g5, bt5, w6, b6) = params

    def layer(h, w, g, bt):
        z = jnp.dot(h.astype(jnp.bfloat16), w.astype(jnp.bfloat16),
                    preferred_element_type=jnp.float32)
        mean = jnp.mean(z, axis=0, keepdims=True)
        var = jnp.maximum(jnp.mean(z * z, axis=0, keepdims=True) - mean * mean, 0.0)
        scale = g * jax.lax.rsqrt(var + EPS)
        shift = bt - mean * scale
        return jnp.maximum(z * scale + shift, 0.0)

    h = x
    h = layer(h, w1, g1, bt1)
    h = layer(h, w2, g2, bt2)
    h = layer(h, w3, g3, bt3)
    h = layer(h, w4, g4, bt4)
    h = layer(h, w5, g5, bt5)
    z = jnp.sum(h * w6.reshape(1, -1), axis=-1, keepdims=True) + b6
    return jnp.squeeze(jax.nn.sigmoid(z))


if __name__ == "__main__":
    B, INPUT_SIZE = 8, 32
    key = jax.random.PRNGKey(0)
    key, kx, kp = jax.random.split(key, 3)

    x = jax.random.normal(kx, (B, INPUT_SIZE), jnp.float32)
    params = init_params(kp, INPUT_SIZE)

    y = jax.block_until_ready(mlp_forward(x, params))
    assert y.shape == (B,), y.shape

    # Tight check vs a pure-JAX mirror of the kernel math (catches any
    # packing/slicing/layer-plumbing bug; tolerance covers MXU-vs-XLA
    # accumulation-order and bf16 re-rounding noise only).
    y_kmath = mlp_reference_kernel_math(x, params)
    assert jnp.allclose(y, y_kmath, rtol=2e-3, atol=2e-3), (y, y_kmath)

    # Loose check vs the faithful f32 PyTorch-semantics reference: the only
    # approximation is bf16 matmul inputs (f32 accumulation / stats).
    y_ref = mlp_reference_f32(x, params)
    assert jnp.allclose(y, y_ref, rtol=3e-2, atol=3e-2), (y, y_ref)

    print("KERNEL_OK")
</pallas_src>

<mosaic_0001>
module attributes {stable_mosaic.version = 11 : i64} {
  func.func @mlp_kernel(%arg0: memref<8x32xf32, #tpu.memory_space<vmem>>, %arg1: memref<32x64xbf16, #tpu.memory_space<vmem>>, %arg2: memref<64x128xbf16, #tpu.memory_space<vmem>>, %arg3: memref<128x256xbf16, #tpu.memory_space<vmem>>, %arg4: memref<256x64xbf16, #tpu.memory_space<vmem>>, %arg5: memref<64x32xbf16, #tpu.memory_space<vmem>>, %arg6: memref<12x256xf32, #tpu.memory_space<vmem>>, %arg7: memref<8x1xf32, #tpu.memory_space<vmem>>) attributes {dimension_semantics = [], scalar_prefetch = 0 : i64, scratch_operands = 0 : i64, tpu.core_type = #tpu.core_type<tc>} {
    %c0 = arith.constant 0 : index
    %c0_0 = arith.constant 0 : index
    %0 = vector.load %arg0[%c0, %c0_0] : memref<8x32xf32, #tpu.memory_space<vmem>>, vector<8x32xf32>
    %1 = arith.truncf %0 : vector<8x32xf32> to vector<8x32xbf16>
    %c0_1 = arith.constant 0 : index
    %c0_2 = arith.constant 0 : index
    %2 = vector.load %arg1[%c0_1, %c0_2] : memref<32x64xbf16, #tpu.memory_space<vmem>>, vector<32x64xbf16>
    %cst = arith.constant dense<0.000000e+00> : vector<8x64xf32>
    %3 = tpu.matmul %1, %2, %cst {dimension_numbers = #tpu.dot_dimension_numbers<[1], [0], [0], [1], [0, 0, 1, 1], [], []>} : vector<8x32xbf16>, vector<32x64xbf16>, vector<8x64xf32> -> vector<8x64xf32>
    %cst_3 = arith.constant dense<0.000000e+00> : vector<64xf32>
    %4 = vector.multi_reduction <add>, %3, %cst_3 [0] : vector<8x64xf32> to vector<64xf32>
    %5 = vector.shape_cast %4 : vector<64xf32> to vector<1x64xf32>
    %6 = arith.mulf %3, %3 : vector<8x64xf32>
    %cst_4 = arith.constant dense<0.000000e+00> : vector<64xf32>
    %7 = vector.multi_reduction <add>, %6, %cst_4 [0] : vector<8x64xf32> to vector<64xf32>
    %8 = vector.shape_cast %7 : vector<64xf32> to vector<1x64xf32>
    %cst_5 = arith.constant 1.250000e-01 : f32
    %9 = vector.broadcast %cst_5 : f32 to vector<1x64xf32>
    %10 = arith.mulf %5, %9 : vector<1x64xf32>
    %cst_6 = arith.constant 1.250000e-01 : f32
    %11 = vector.broadcast %cst_6 : f32 to vector<1x64xf32>
    %12 = arith.mulf %8, %11 : vector<1x64xf32>
    %13 = arith.mulf %10, %10 : vector<1x64xf32>
    %14 = arith.subf %12, %13 : vector<1x64xf32>
    %cst_7 = arith.constant 0.000000e+00 : f32
    %15 = vector.broadcast %cst_7 : f32 to vector<1x64xf32>
    %16 = arith.maximumf %14, %15 : vector<1x64xf32>
    %c0_8 = arith.constant 0 : index
    %c0_9 = arith.constant 0 : index
    %17 = vector.load %arg6[%c0_8, %c0_9] : memref<12x256xf32, #tpu.memory_space<vmem>>, vector<1x64xf32>
    %c1 = arith.constant 1 : index
    %c0_10 = arith.constant 0 : index
    %18 = vector.load %arg6[%c1, %c0_10] : memref<12x256xf32, #tpu.memory_space<vmem>>, vector<1x64xf32>
    %cst_11 = arith.constant 9.99999974E-6 : f32
    %19 = vector.broadcast %cst_11 : f32 to vector<1x64xf32>
    %20 = arith.addf %16, %19 : vector<1x64xf32>
    %21 = math.rsqrt %20 : vector<1x64xf32>
    %22 = arith.mulf %17, %21 : vector<1x64xf32>
    %23 = arith.mulf %10, %22 : vector<1x64xf32>
    %24 = arith.subf %18, %23 : vector<1x64xf32>
    %25 = vector.broadcast %22 : vector<1x64xf32> to vector<8x64xf32>
    %26 = arith.mulf %3, %25 : vector<8x64xf32>
    %27 = vector.broadcast %24 : vector<1x64xf32> to vector<8x64xf32>
    %28 = arith.addf %26, %27 : vector<8x64xf32>
    %cst_12 = arith.constant 0.000000e+00 : f32
    %29 = vector.broadcast %cst_12 : f32 to vector<8x64xf32>
    %30 = arith.maximumf %28, %29 : vector<8x64xf32>
    %31 = arith.truncf %30 : vector<8x64xf32> to vector<8x64xbf16>
    %c0_13 = arith.constant 0 : index
    %c0_14 = arith.constant 0 : index
    %32 = vector.load %arg2[%c0_13, %c0_14] : memref<64x128xbf16, #tpu.memory_space<vmem>>, vector<64x128xbf16>
    %cst_15 = arith.constant dense<0.000000e+00> : vector<8x128xf32>
    %33 = tpu.matmul %31, %32, %cst_15 {dimension_numbers = #tpu.dot_dimension_numbers<[1], [0], [0], [1], [0, 0, 1, 1], [], []>} : vector<8x64xbf16>, vector<64x128xbf16>, vector<8x128xf32> -> vector<8x128xf32>
    %cst_16 = arith.constant dense<0.000000e+00> : vector<128xf32>
    %34 = vector.multi_reduction <add>, %33, %cst_16 [0] : vector<8x128xf32> to vector<128xf32>
    %35 = vector.shape_cast %34 : vector<128xf32> to vector<1x128xf32>
    %36 = arith.mulf %33, %33 : vector<8x128xf32>
    %cst_17 = arith.constant dense<0.000000e+00> : vector<128xf32>
    %37 = vector.multi_reduction <add>, %36, %cst_17 [0] : vector<8x128xf32> to vector<128xf32>
    %38 = vector.shape_cast %37 : vector<128xf32> to vector<1x128xf32>
    %cst_18 = arith.constant 1.250000e-01 : f32
    %39 = vector.broadcast %cst_18 : f32 to vector<1x128xf32>
    %40 = arith.mulf %35, %39 : vector<1x128xf32>
    %cst_19 = arith.constant 1.250000e-01 : f32
    %41 = vector.broadcast %cst_19 : f32 to vector<1x128xf32>
    %42 = arith.mulf %38, %41 : vector<1x128xf32>
    %43 = arith.mulf %40, %40 : vector<1x128xf32>
    %44 = arith.subf %42, %43 : vector<1x128xf32>
    %cst_20 = arith.constant 0.000000e+00 : f32
    %45 = vector.broadcast %cst_20 : f32 to vector<1x128xf32>
    %46 = arith.maximumf %44, %45 : vector<1x128xf32>
    %c2 = arith.constant 2 : index
    %c0_21 = arith.constant 0 : index
    %47 = vector.load %arg6[%c2, %c0_21] : memref<12x256xf32, #tpu.memory_space<vmem>>, vector<1x128xf32>
    %c3 = arith.constant 3 : index
    %c0_22 = arith.constant 0 : index
    %48 = vector.load %arg6[%c3, %c0_22] : memref<12x256xf32, #tpu.memory_space<vmem>>, vector<1x128xf32>
    %cst_23 = arith.constant 9.99999974E-6 : f32
    %49 = vector.broadcast %cst_23 : f32 to vector<1x128xf32>
    %50 = arith.addf %46, %49 : vector<1x128xf32>
    %51 = math.rsqrt %50 : vector<1x128xf32>
    %52 = arith.mulf %47, %51 : vector<1x128xf32>
    %53 = arith.mulf %40, %52 : vector<1x128xf32>
    %54 = arith.subf %48, %53 : vector<1x128xf32>
    %55 = vector.broadcast %52 : vector<1x128xf32> to vector<8x128xf32>
    %56 = arith.mulf %33, %55 : vector<8x128xf32>
    %57 = vector.broadcast %54 : vector<1x128xf32> to vector<8x128xf32>
    %58 = arith.addf %56, %57 : vector<8x128xf32>
    %cst_24 = arith.constant 0.000000e+00 : f32
    %59 = vector.broadcast %cst_24 : f32 to vector<8x128xf32>
    %60 = arith.maximumf %58, %59 : vector<8x128xf32>
    %61 = arith.truncf %60 : vector<8x128xf32> to vector<8x128xbf16>
    %c0_25 = arith.constant 0 : index
    %c0_26 = arith.constant 0 : index
    %62 = vector.load %arg3[%c0_25, %c0_26] : memref<128x256xbf16, #tpu.memory_space<vmem>>, vector<128x256xbf16>
    %cst_27 = arith.constant dense<0.000000e+00> : vector<8x256xf32>
    %63 = tpu.matmul %61, %62, %cst_27 {dimension_numbers = #tpu.dot_dimension_numbers<[1], [0], [0], [1], [0, 0, 1, 1], [], []>} : vector<8x128xbf16>, vector<128x256xbf16>, vector<8x256xf32> -> vector<8x256xf32>
    %cst_28 = arith.constant dense<0.000000e+00> : vector<256xf32>
    %64 = vector.multi_reduction <add>, %63, %cst_28 [0] : vector<8x256xf32> to vector<256xf32>
    %65 = vector.shape_cast %64 : vector<256xf32> to vector<1x256xf32>
    %66 = arith.mulf %63, %63 : vector<8x256xf32>
    %cst_29 = arith.constant dense<0.000000e+00> : vector<256xf32>
    %67 = vector.multi_reduction <add>, %66, %cst_29 [0] : vector<8x256xf32> to vector<256xf32>
    %68 = vector.shape_cast %67 : vector<256xf32> to vector<1x256xf32>
    %cst_30 = arith.constant 1.250000e-01 : f32
    %69 = vector.broadcast %cst_30 : f32 to vector<1x256xf32>
    %70 = arith.mulf %65, %69 : vector<1x256xf32>
    %cst_31 = arith.constant 1.250000e-01 : f32
    %71 = vector.broadcast %cst_31 : f32 to vector<1x256xf32>
    %72 = arith.mulf %68, %71 : vector<1x256xf32>
    %73 = arith.mulf %70, %70 : vector<1x256xf32>
    %74 = arith.subf %72, %73 : vector<1x256xf32>
    %cst_32 = arith.constant 0.000000e+00 : f32
    %75 = vector.broadcast %cst_32 : f32 to vector<1x256xf32>
    %76 = arith.maximumf %74, %75 : vector<1x256xf32>
    %c4 = arith.constant 4 : index
    %c0_33 = arith.constant 0 : index
    %77 = vector.load %arg6[%c4, %c0_33] : memref<12x256xf32, #tpu.memory_space<vmem>>, vector<1x256xf32>
    %c5 = arith.constant 5 : index
    %c0_34 = arith.constant 0 : index
    %78 = vector.load %arg6[%c5, %c0_34] : memref<12x256xf32, #tpu.memory_space<vmem>>, vector<1x256xf32>
    %cst_35 = arith.constant 9.99999974E-6 : f32
    %79 = vector.broadcast %cst_35 : f32 to vector<1x256xf32>
    %80 = arith.addf %76, %79 : vector<1x256xf32>
    %81 = math.rsqrt %80 : vector<1x256xf32>
    %82 = arith.mulf %77, %81 : vector<1x256xf32>
    %83 = arith.mulf %70, %82 : vector<1x256xf32>
    %84 = arith.subf %78, %83 : vector<1x256xf32>
    %85 = vector.broadcast %82 : vector<1x256xf32> to vector<8x256xf32>
    %86 = arith.mulf %63, %85 : vector<8x256xf32>
    %87 = vector.broadcast %84 : vector<1x256xf32> to vector<8x256xf32>
    %88 = arith.addf %86, %87 : vector<8x256xf32>
    %cst_36 = arith.constant 0.000000e+00 : f32
    %89 = vector.broadcast %cst_36 : f32 to vector<8x256xf32>
    %90 = arith.maximumf %88, %89 : vector<8x256xf32>
    %91 = arith.truncf %90 : vector<8x256xf32> to vector<8x256xbf16>
    %c0_37 = arith.constant 0 : index
    %c0_38 = arith.constant 0 : index
    %92 = vector.load %arg4[%c0_37, %c0_38] : memref<256x64xbf16, #tpu.memory_space<vmem>>, vector<256x64xbf16>
    %cst_39 = arith.constant dense<0.000000e+00> : vector<8x64xf32>
    %93 = tpu.matmul %91, %92, %cst_39 {dimension_numbers = #tpu.dot_dimension_numbers<[1], [0], [0], [1], [0, 0, 1, 1], [], []>} : vector<8x256xbf16>, vector<256x64xbf16>, vector<8x64xf32> -> vector<8x64xf32>
    %cst_40 = arith.constant dense<0.000000e+00> : vector<64xf32>
    %94 = vector.multi_reduction <add>, %93, %cst_40 [0] : vector<8x64xf32> to vector<64xf32>
    %95 = vector.shape_cast %94 : vector<64xf32> to vector<1x64xf32>
    %96 = arith.mulf %93, %93 : vector<8x64xf32>
    %cst_41 = arith.constant dense<0.000000e+00> : vector<64xf32>
    %97 = vector.multi_reduction <add>, %96, %cst_41 [0] : vector<8x64xf32> to vector<64xf32>
    %98 = vector.shape_cast %97 : vector<64xf32> to vector<1x64xf32>
    %cst_42 = arith.constant 1.250000e-01 : f32
    %99 = vector.broadcast %cst_42 : f32 to vector<1x64xf32>
    %100 = arith.mulf %95, %99 : vector<1x64xf32>
    %cst_43 = arith.constant 1.250000e-01 : f32
    %101 = vector.broadcast %cst_43 : f32 to vector<1x64xf32>
    %102 = arith.mulf %98, %101 : vector<1x64xf32>
    %103 = arith.mulf %100, %100 : vector<1x64xf32>
    %104 = arith.subf %102, %103 : vector<1x64xf32>
    %cst_44 = arith.constant 0.000000e+00 : f32
    %105 = vector.broadcast %cst_44 : f32 to vector<1x64xf32>
    %106 = arith.maximumf %104, %105 : vector<1x64xf32>
    %c6 = arith.constant 6 : index
    %c0_45 = arith.constant 0 : index
    %107 = vector.load %arg6[%c6, %c0_45] : memref<12x256xf32, #tpu.memory_space<vmem>>, vector<1x64xf32>
    %c7 = arith.constant 7 : index
    %c0_46 = arith.constant 0 : index
    %108 = vector.load %arg6[%c7, %c0_46] : memref<12x256xf32, #tpu.memory_space<vmem>>, vector<1x64xf32>
    %cst_47 = arith.constant 9.99999974E-6 : f32
    %109 = vector.broadcast %cst_47 : f32 to vector<1x64xf32>
    %110 = arith.addf %106, %109 : vector<1x64xf32>
    %111 = math.rsqrt %110 : vector<1x64xf32>
    %112 = arith.mulf %107, %111 : vector<1x64xf32>
    %113 = arith.mulf %100, %112 : vector<1x64xf32>
    %114 = arith.subf %108, %113 : vector<1x64xf32>
    %115 = vector.broadcast %112 : vector<1x64xf32> to vector<8x64xf32>
    %116 = arith.mulf %93, %115 : vector<8x64xf32>
    %117 = vector.broadcast %114 : vector<1x64xf32> to vector<8x64xf32>
    %118 = arith.addf %116, %117 : vector<8x64xf32>
    %cst_48 = arith.constant 0.000000e+00 : f32
    %119 = vector.broadcast %cst_48 : f32 to vector<8x64xf32>
    %120 = arith.maximumf %118, %119 : vector<8x64xf32>
    %121 = arith.truncf %120 : vector<8x64xf32> to vector<8x64xbf16>
    %c0_49 = arith.constant 0 : index
    %c0_50 = arith.constant 0 : index
    %122 = vector.load %arg5[%c0_49, %c0_50] : memref<64x32xbf16, #tpu.memory_space<vmem>>, vector<64x32xbf16>
    %cst_51 = arith.constant dense<0.000000e+00> : vector<8x32xf32>
    %123 = tpu.matmul %121, %122, %cst_51 {dimension_numbers = #tpu.dot_dimension_numbers<[1], [0], [0], [1], [0, 0, 1, 1], [], []>} : vector<8x64xbf16>, vector<64x32xbf16>, vector<8x32xf32> -> vector<8x32xf32>
    %cst_52 = arith.constant dense<0.000000e+00> : vector<32xf32>
    %124 = vector.multi_reduction <add>, %123, %cst_52 [0] : vector<8x32xf32> to vector<32xf32>
    %125 = vector.shape_cast %124 : vector<32xf32> to vector<1x32xf32>
    %126 = arith.mulf %123, %123 : vector<8x32xf32>
    %cst_53 = arith.constant dense<0.000000e+00> : vector<32xf32>
    %127 = vector.multi_reduction <add>, %126, %cst_53 [0] : vector<8x32xf32> to vector<32xf32>
    %128 = vector.shape_cast %127 : vector<32xf32> to vector<1x32xf32>
    %cst_54 = arith.constant 1.250000e-01 : f32
    %129 = vector.broadcast %cst_54 : f32 to vector<1x32xf32>
    %130 = arith.mulf %125, %129 : vector<1x32xf32>
    %cst_55 = arith.constant 1.250000e-01 : f32
    %131 = vector.broadcast %cst_55 : f32 to vector<1x32xf32>
    %132 = arith.mulf %128, %131 : vector<1x32xf32>
    %133 = arith.mulf %130, %130 : vector<1x32xf32>
    %134 = arith.subf %132, %133 : vector<1x32xf32>
    %cst_56 = arith.constant 0.000000e+00 : f32
    %135 = vector.broadcast %cst_56 : f32 to vector<1x32xf32>
    %136 = arith.maximumf %134, %135 : vector<1x32xf32>
    %c8 = arith.constant 8 : index
    %c0_57 = arith.constant 0 : index
    %137 = vector.load %arg6[%c8, %c0_57] : memref<12x256xf32, #tpu.memory_space<vmem>>, vector<1x32xf32>
    %c9 = arith.constant 9 : index
    %c0_58 = arith.constant 0 : index
    %138 = vector.load %arg6[%c9, %c0_58] : memref<12x256xf32, #tpu.memory_space<vmem>>, vector<1x32xf32>
    %cst_59 = arith.constant 9.99999974E-6 : f32
    %139 = vector.broadcast %cst_59 : f32 to vector<1x32xf32>
    %140 = arith.addf %136, %139 : vector<1x32xf32>
    %141 = math.rsqrt %140 : vector<1x32xf32>
    %142 = arith.mulf %137, %141 : vector<1x32xf32>
    %143 = arith.mulf %130, %142 : vector<1x32xf32>
    %144 = arith.subf %138, %143 : vector<1x32xf32>
    %145 = vector.broadcast %142 : vector<1x32xf32> to vector<8x32xf32>
    %146 = arith.mulf %123, %145 : vector<8x32xf32>
    %147 = vector.broadcast %144 : vector<1x32xf32> to vector<8x32xf32>
    %148 = arith.addf %146, %147 : vector<8x32xf32>
    %cst_60 = arith.constant 0.000000e+00 : f32
    %149 = vector.broadcast %cst_60 : f32 to vector<8x32xf32>
    %150 = arith.maximumf %148, %149 : vector<8x32xf32>
    %c10 = arith.constant 10 : index
    %c0_61 = arith.constant 0 : index
    %151 = vector.load %arg6[%c10, %c0_61] : memref<12x256xf32, #tpu.memory_space<vmem>>, vector<1x32xf32>
    %c11 = arith.constant 11 : index
    %c0_62 = arith.constant 0 : index
    %152 = vector.load %arg6[%c11, %c0_62] : memref<12x256xf32, #tpu.memory_space<vmem>>, vector<1x1xf32>
    %153 = vector.broadcast %151 : vector<1x32xf32> to vector<8x32xf32>
    %154 = arith.mulf %150, %153 : vector<8x32xf32>
    %cst_63 = arith.constant dense<0.000000e+00> : vector<8xf32>
    %155 = vector.multi_reduction <add>, %154, %cst_63 [1] : vector<8x32xf32> to vector<8xf32>
    %156 = vector.shape_cast %155 : vector<8xf32> to vector<8x1xf32>
    %157 = vector.broadcast %152 : vector<1x1xf32> to vector<8x1xf32>
    %158 = arith.addf %156, %157 : vector<8x1xf32>
    %159 = arith.negf %158 : vector<8x1xf32>
    %160 = math.exp %159 : vector<8x1xf32>
    %cst_64 = arith.constant 1.000000e+00 : f32
    %161 = vector.broadcast %cst_64 : f32 to vector<8x1xf32>
    %162 = arith.addf %161, %160 : vector<8x1xf32>
    %163 = arith.divf %161, %162 : vector<8x1xf32>
    %c0_65 = arith.constant 0 : index
    %c0_66 = arith.constant 0 : index
    %164 = vector.load %arg7[%c0_65, %c0_66] : memref<8x1xf32, #tpu.memory_space<vmem>>, vector<8x1xf32>
    tpu.vector_store %arg7[%c0_65, %c0_66], %163 {strides = array<i32>} : memref<8x1xf32, #tpu.memory_space<vmem>>, vector<8x1xf32>,
    return
  }
}

</mosaic_0001>

<bundles_post_ra>
// kernel: tpu_custom_call.1
= control target key start
LH: loop header
LB: loop body
LE: loop exit
PB: predicated region body
PF: predicated region fallthrough
CT: control target
= control target key end

     0   :  { %v984_v0 = vmov 0.0   ;;  %vm985_vm0 = vmmov 0   ;;  %vm45_vm1 = vcmask 261120   ;;  %vm89_vm2 = vcmask 523264   ;;  %s1229_s1 = inlined_call_operand.vmem [shape: bf16[32,64], index: 1, kind: input, shape index: {}]   ;;  %s1230_s0 = inlined_call_operand.vmem [shape: f32[8,32], index: 0, kind: input, shape index: {}]   ;;  %s1231_s2 = inlined_call_operand.vmem [shape: bf16[64,128], index: 2, kind: input, shape index: {}]   ;;  %s1232_s6 = inlined_call_operand.vmem [shape: f32[12,256], index: 6, kind: input, shape index: {}]   ;;  %s1233_s3 = inlined_call_operand.vmem [shape: bf16[128,256], index: 3, kind: input, shape index: {}]   ;;  %s1234_s4 = inlined_call_operand.vmem [shape: bf16[256,64], index: 4, kind: input, shape index: {}]   ;;  %s1235_s5 = inlined_call_operand.vmem [shape: bf16[64,32], index: 5, kind: input, shape index: {}]   ;;  %s1236_s7 = inlined_call_operand.vmem [shape: f32[8,1], index: 7, kind: output, shape index: {}]  }
   0x1   :  { %882 = vmatprep.subr.bf16.mxu0 %v984_v0  ;;  %v918_v1 = vld [vmem:[%s1229_s1] sm:$0xff]   ;;  %886 = vmatprep.mubr.msk.bf16.mxu0 %vm985_vm0, %v984_v0  ;;  %v919_v2 = vld [vmem:[%s1229_s1 + $0x8] sm:$0xff]   ;;  %v922_v7 = vld [vmem:[%s1231_s2 + $0x10] sm:$0xff]   ;;  %v986_v60 = vmov 0   ;;  %vm793_vm3 = vcmask 7168  }
   0x2   :  { %890 = vmatprep.subr.bf16.mxu1 %v984_v0  ;;  %898 = vmatprep.mubr.msk.bf16.mxu1 %vm985_vm0, %v984_v0  ;;  %v27_v3 = vld [vmem:[%s1230_s0] sm:$0xff]  ;;  %v921_v6 = vld [vmem:[%s1231_s2 + $0x8] sm:$0xff]   ;;  %v923_v8 = vld [vmem:[%s1231_s2 + $0x18] sm:$0xff]  }
   0x3   :  { %883 = vmatpush3.bf16.msra.mxu0 %v918_v1  ;;  %v28_v4 = vpack.c.bf16 %v27_v3, %v27_v3  ;;  %v920_v5 = vld [vmem:[%s1231_s2] sm:$0xff]   ;;  %v929_v46 = vld [vmem:[%s1233_s3 + $0x14] ss:$8 sps:$4 sm:$0xff]   ;;  %v927_v47 = vld [vmem:[%s1233_s3 + $0x10] ss:$8 sps:$4 sm:$0xff]  }
   0x4   :  { %884 = vmatprep.subr.bf16.mxu0 %v984_v0  ;;  %891 = vmatpush3.bf16.msra.mxu1 %v920_v5  ;;  %v110_v34 = vld [vmem:[%s1232_s6] ss:$0 sm:$0xff]  ;;  %v111_v37 = vld [vmem:[%s1232_s6 + $0x1] ss:$0 sm:$0xff]  ;;  %v926_v44 = vld [vmem:[%s1233_s3 + $0x4] ss:$8 sps:$4 sm:$0xff]  }
   0x5   :  { %892 = vmatprep.subr.bf16.mxu1 %v984_v0  ;;  %v924_v45 = vld [vmem:[%s1233_s3] ss:$8 sps:$4 sm:$0xff]   ;;  %v932_v48 = vld [vmem:[%s1233_s3 + $0x24] ss:$8 sps:$4 sm:$0xff]   ;;  %v935_v50 = vld [vmem:[%s1233_s3 + $0x34] ss:$8 sps:$4 sm:$0xff]  }
   0x6   :  { %v930_v49 = vld [vmem:[%s1233_s3 + $0x20] ss:$8 sps:$4 sm:$0xff]   ;;  %v933_v51 = vld [vmem:[%s1233_s3 + $0x30] ss:$8 sps:$4 sm:$0xff]   ;;  %v938_v52 = vld [vmem:[%s1233_s3 + $0x44] ss:$8 sps:$4 sm:$0xff]  }
   0x7   :  { %885 = vmatpush3.bf16.msra.mxu0 %v919_v2  ;;  %v936_v53 = vld [vmem:[%s1233_s3 + $0x40] ss:$8 sps:$4 sm:$0xff]   ;;  %v941_v54 = vld [vmem:[%s1233_s3 + $0x54] ss:$8 sps:$4 sm:$0xff]   ;;  %v939_v55 = vld [vmem:[%s1233_s3 + $0x50] ss:$8 sps:$4 sm:$0xff]  }
   0x8   :  { %893 = vmatpush3.bf16.msra.mxu1 %v921_v6  ;;  %321 = vmatprep.subr.bf16.mxu0 %v926_v44  ;;  %v944_v56 = vld [vmem:[%s1233_s3 + $0x64] ss:$8 sps:$4 sm:$0xff]   ;;  %v942_v57 = vld [vmem:[%s1233_s3 + $0x60] ss:$8 sps:$4 sm:$0xff]   ;;  %v945_v58 = vld [vmem:[%s1233_s3 + $0x70] ss:$8 sps:$4 sm:$0xff]  }
   0x9   :  { %894 = vmatprep.subr.bf16.mxu1 %v984_v0  ;;  %v947_v59 = vld [vmem:[%s1233_s3 + $0x74] ss:$8 sps:$4 sm:$0xff]  }
   0xa   :  { %887 = vmatmul.mubr.msk.bf16.vlgmr.msra.gmra.mrb[0].mxu0 %vm45_vm1, %v28_v4  ;;  %v961_v44 = vld [vmem:[%s1234_s4 + $0x30] sm:$0xff]  }
   0xb   :  { %322 = vmatpush1.bf16.msra.mxu0 %v924_v45  ;;  %353 = vmatprep.mubr.bf16.mxu0 %v986_v60  ;;  %v962_v45 = vld [vmem:[%s1234_s4 + $0x78] sm:$0xff]  }
   0xc   :  { %895 = vmatpush3.bf16.msra.mxu1 %v922_v7  ;;  %323 = vmatprep.subr.bf16.mxu0 %v929_v46  ;;  %v963_v46 = vld [vmem:[%s1234_s4 + $0x38] sm:$0xff]  }
   0xd   :  { %896 = vmatprep.subr.bf16.mxu1 %v984_v0 }
   0xf   :  { %324 = vmatpush1.bf16.msra.mxu0 %v927_v47 }
  0x10   :  { %897 = vmatpush3.bf16.msra.mxu1 %v923_v8  ;;  %325 = vmatprep.subr.bf16.mxu0 %v932_v48 }
  0x13   :  { %326 = vmatpush1.bf16.msra.mxu0 %v930_v49 }
  0x14   :  { %327 = vmatprep.subr.bf16.mxu0 %v935_v50 }
  0x17   :  { %328 = vmatpush1.bf16.msra.mxu0 %v933_v51 }
  0x18   :  { %329 = vmatprep.subr.bf16.mxu0 %v938_v52 }
  0x1b   :  { %330 = vmatpush1.bf16.msra.mxu0 %v936_v53 }
  0x1c   :  { %331 = vmatprep.subr.bf16.mxu0 %v941_v54 }
  0x1f   :  { %332 = vmatpush1.bf16.msra.mxu0 %v939_v55 }
  0x20   :  { %333 = vmatprep.subr.bf16.mxu0 %v944_v56 }
  0x23   :  { %334 = vmatpush1.bf16.msra.mxu0 %v942_v57 }
  0x24   :  { %335 = vmatprep.subr.bf16.mxu0 %v947_v59 }
  0x27   :  { %336 = vmatpush1.bf16.msra.mxu0 %v945_v58 }
  0x28   :  { %902 = vmatprep.subr.bf16.mxu0 %v984_v0 }
  0xdd   :  { %v83_v9 = vpop.f32.mrb[0].mxu0 }
  0xde   :  { %v90_v10 = vsel %vm89_vm2, %v83_v9, 0.0  ;;  %v97_v11 = vmul.f32 %v83_v9, %v83_v9  ;;  %v888_v12 = vpop.f32.mrb[1].mxu0 }
  0xdf   :  { %v91_v13 = vrot.slane %v90_v10, 4  ;;  %v86_v14 = vpop.f32.mrb[2].mxu0 }
  0xe0   :  { %v98_v15 = vsel %vm89_vm2, %v97_v11, 0.0  ;;  %v889_v16 = vpop.f32.mrb[3].mxu0 }
  0xe1   :  { %v92_v17 = vadd.f32 %v91_v13, %v90_v10  ;;  %v99_v18 = vrot.slane %v98_v15, 4 }
  0xe3   :  { %v93_v19 = vrot.slane %v92_v17, 2  ;;  %v100_v20 = vadd.f32 %v99_v18, %v98_v15 }
  0xe5   :  { %v94_v21 = vadd.f32 %v93_v19, %v92_v17  ;;  %v101_v22 = vrot.slane %v100_v20, 2 }
  0xe7   :  { %v95_v23 = vrot.slane %v94_v21, 1  ;;  %v102_v24 = vadd.f32 %v101_v22, %v100_v20 }
  0xe9   :  { %v96_v25 = vadd.f32 %v95_v23, %v94_v21  ;;  %v103_v26 = vrot.slane %v102_v24, 1  ;;  %v214_v21 = vld [vmem:[%s1232_s6 + $0x2] ss:$0 sm:$0xff] }
  0xeb   :  { %v104_v27 = vadd.f32 %v103_v26, %v102_v24  ;;  %v105_v28 = vmul.f32 0.125, %v96_v25  ;;  %v215_v24 = vld [vmem:[%s1232_s6 + $0x3] ss:$0 sm:$0xff] }
  0xed   :  { %v106_v29 = vmul.f32 0.125, %v104_v27  ;;  %v107_v30 = vmul.f32 %v105_v28, %v105_v28 }
  0xef   :  { %v108_v31 = vsub.f32 %v106_v29, %v107_v30 }
  0xf1   :  { %v109_v32 = vmax.f32 %v108_v31, 0.0  ;;  %v948_v31 = vld [vmem:[%s1234_s4 + $0x40] sm:$0xff]  }
  0xf2   :  { %855 = vmatprep.subr.bf16.mxu1 %v948_v31 }
  0xf3   :  { %v112_v33 = vadd.f32 1e-05, %v109_v32  ;;  %v949_v32 = vld [vmem:[%s1234_s4] sm:$0xff]  }
  0xf5   :  { %968 = vrsqrt.f32 %v112_v33  ;;  %v950_v33 = vld [vmem:[%s1234_s4 + $0x48] sm:$0xff]  }
  0xff   :  { %v969_v35 = vpop.eup %968 }
 0x100   :  { %v114_v36 = vmul.f32 %v969_v35, %v110_v34  ;;  %v951_v34 = vld [vmem:[%s1234_s4 + $0x8] sm:$0xff]   ;;  %v952_v35 = vld [vmem:[%s1234_s4 + $0x50] sm:$0xff]  }
 0x102   :  { %v115_v38 = vmul.f32 %v114_v36, %v105_v28  ;;  %v117_v40 = vmul.f32 %v114_v36, %v83_v9  ;;  %v953_v36 = vld [vmem:[%s1234_s4 + $0x10] sm:$0xff]  }
 0x104   :  { %v116_v39 = vsub.f32 %v111_v37, %v115_v38  ;;  %v954_v37 = vld [vmem:[%s1234_s4 + $0x58] sm:$0xff]  }
 0x105   :  { %v955_v38 = vld [vmem:[%s1234_s4 + $0x18] sm:$0xff]  }
 0x106   :  { %v118_v41 = vadd.f32 %v117_v40, %v116_v39  ;;  %v956_v39 = vld [vmem:[%s1234_s4 + $0x60] sm:$0xff]  }
 0x107   :  { %v957_v40 = vld [vmem:[%s1234_s4 + $0x20] sm:$0xff]  }
 0x108   :  { %v119_v42 = vmax.f32 %v118_v41, 0.0  ;;  %v958_v41 = vld [vmem:[%s1234_s4 + $0x68] sm:$0xff]  }
 0x10a   :  { %v120_v43 = vpack.c.bf16 %v119_v42, %v119_v42  ;;  %v959_v42 = vld [vmem:[%s1234_s4 + $0x28] sm:$0xff]  }
 0x10c   :  { %899 = vmatmul.mubr.msk.bf16.vlgmr.msra.gmra.mrb[0].mxu1 %vm89_vm2, %v120_v43  ;;  %v960_v43 = vld [vmem:[%s1234_s4 + $0x70] sm:$0xff]  }
 0x10d   :  { %856 = vmatpush3.bf16.msra.mxu1 %v949_v32 }
 0x10e   :  { %857 = vmatprep.subr.bf16.mxu1 %v950_v33 }
 0x111   :  { %858 = vmatpush3.bf16.msra.mxu1 %v951_v34 }
 0x112   :  { %859 = vmatprep.subr.bf16.mxu1 %v952_v35 }
 0x115   :  { %860 = vmatpush3.bf16.msra.mxu1 %v953_v36  ;;  %v823_v36 = vld [vmem:[%s1232_s6 + $0x4] ss:$8 sm:$0x3] }
 0x116   :  { %861 = vmatprep.subr.bf16.mxu1 %v954_v37 }
 0x119   :  { %862 = vmatpush3.bf16.msra.mxu1 %v955_v38 }
 0x11a   :  { %863 = vmatprep.subr.bf16.mxu1 %v956_v39 }
 0x11d   :  { %864 = vmatpush3.bf16.msra.mxu1 %v957_v40 }
 0x11e   :  { %865 = vmatprep.subr.bf16.mxu1 %v958_v41 }
 0x121   :  { %866 = vmatpush3.bf16.msra.mxu1 %v959_v42 }
 0x122   :  { %867 = vmatprep.subr.bf16.mxu1 %v960_v43 }
 0x125   :  { %868 = vmatpush3.bf16.msra.mxu1 %v961_v44 }
 0x126   :  { %869 = vmatprep.subr.bf16.mxu1 %v962_v45 }
 0x129   :  { %870 = vmatpush3.bf16.msra.mxu1 %v963_v46 }
 0x1df   :  { %v190_v61 = vpop.f32.mrb[0].mxu1 }
 0x1e0   :  { %v196_v62 = vrot.slane %v190_v61, 4  ;;  %v202_v63 = vmul.f32 %v190_v61, %v190_v61  ;;  %v900_v1 = vpop.f32.mrb[1].mxu1 }
 0x1e1   :  { %v193_v2 = vpop.f32.mrb[2].mxu1 }
 0x1e2   :  { %v197_v3 = vadd.f32 %v196_v62, %v190_v61  ;;  %v203_v4 = vrot.slane %v202_v63, 4  ;;  %v901_v5 = vpop.f32.mrb[3].mxu1 }
 0x1e4   :  { %v198_v6 = vrot.slane %v197_v3, 2  ;;  %v204_v7 = vadd.f32 %v203_v4, %v202_v63 }
 0x1e6   :  { %v199_v8 = vadd.f32 %v198_v6, %v197_v3  ;;  %v205_v9 = vrot.slane %v204_v7, 2 }
 0x1e8   :  { %v200_v10 = vrot.slane %v199_v8, 1  ;;  %v206_v11 = vadd.f32 %v205_v9, %v204_v7 }
 0x1ea   :  { %v201_v12 = vadd.f32 %v200_v10, %v199_v8  ;;  %v207_v13 = vrot.slane %v206_v11, 1 }
 0x1ec   :  { %v208_v14 = vadd.f32 %v207_v13, %v206_v11  ;;  %v209_v15 = vmul.f32 0.125, %v201_v12 }
 0x1ee   :  { %v210_v16 = vmul.f32 0.125, %v208_v14  ;;  %v211_v17 = vmul.f32 %v209_v15, %v209_v15 }
 0x1f0   :  { %v212_v18 = vsub.f32 %v210_v16, %v211_v17 }
 0x1f2   :  { %v213_v19 = vmax.f32 %v212_v18, 0.0 }
 0x1f4   :  { %v216_v20 = vadd.f32 1e-05, %v213_v19 }
 0x1f6   :  { %970 = vrsqrt.f32 %v216_v20 }
 0x200   :  { %v971_v22 = vpop.eup %970 }
 0x201   :  { %v218_v23 = vmul.f32 %v971_v22, %v214_v21 }
 0x203   :  { %v219_v25 = vmul.f32 %v218_v23, %v209_v15  ;;  %v221_v27 = vmul.f32 %v218_v23, %v190_v61 }
 0x205   :  { %v220_v26 = vsub.f32 %v215_v24, %v219_v25 }
 0x207   :  { %v222_v28 = vadd.f32 %v221_v27, %v220_v26  ;;  %v987_v26 = vmov 1966171168  }
 0x208   :  { %v410_v27 = vunpack.c.l.s4 %v987_v26  ;;  %v664_v26 = vld [vmem:[%s1232_s6 + $0x6] ss:$0 sm:$0xff] }
 0x209   :  { %v223_v29 = vmax.f32 %v222_v28, 0.0  ;;  %v412_v28 = vlaneseq }
 0x20b   :  { %v224_v30 = vpack.c.bf16 %v223_v29, %v223_v29  ;;  %v411_v29 = vunpack.c.0.s8 %v410_v27 }
 0x20d   :  { %354 = vmatmul.mubr.bf16.vlgmr.msra.gmra.mrb[4].mxu0 %v224_v30  ;;  %v413_v30 = vshrl.u32 %v412_v28, 7 }
 0x20e   :  { %910 = vmatprep.mubr.msk.bf16.mxu0 %vm985_vm0, %v984_v0 }
 0x20f   :  { %v414_v32 = vsub.s32 %v411_v29, %v413_v30  ;;  %v428_v38 = vsub.s32 0, %v413_v30  ;;  %v432_v39 = vsub.s32 1, %v413_v30  ;;  %v665_v29 = vld [vmem:[%s1232_s6 + $0x7] ss:$0 sm:$0xff] }
 0x2e0   :  { %v1174_v47 = vpop.f32.mrb[4].mxu0 }
 0x2e1   :  { %v362_v48 = vrot.slane %v1174_v47, 4  ;;  %v374_v49 = vmul.f32 %v1174_v47, %v1174_v47  ;;  %v357_v50 = vpop.f32.mrb[5].mxu0 }
 0x2e2   :  { %v368_v51 = vrot.slane %v357_v50, 4  ;;  %v375_v52 = vmul.f32 %v357_v50, %v357_v50  ;;  %v359_v53 = vpop.f32.mrb[6].mxu0 }
 0x2e3   :  { %v363_v54 = vadd.f32 %v362_v48, %v1174_v47  ;;  %v376_v55 = vrot.slane %v374_v49, 4  ;;  %v360_v56 = vpop.f32.mrb[7].mxu0 }
 0x2e4   :  { %v369_v57 = vadd.f32 %v368_v51, %v357_v50  ;;  %v382_v58 = vrot.slane %v375_v52, 4  ;;  %v824_v51 = vld [vmem:[%s1232_s6 + $0x5] ss:$8 sm:$0x3] }
 0x2e5   :  { %v364_v59 = vrot.slane %v363_v54, 2  ;;  %v377_v60 = vadd.f32 %v376_v55, %v374_v49 }
 0x2e6   :  { %v370_v61 = vrot.slane %v369_v57, 2  ;;  %v383_v62 = vadd.f32 %v382_v58, %v375_v52 }
 0x2e7   :  { %v365_v63 = vadd.f32 %v364_v59, %v363_v54  ;;  %v378_v1 = vrot.slane %v377_v60, 2 }
 0x2e8   :  { %v371_v2 = vadd.f32 %v370_v61, %v369_v57  ;;  %v384_v3 = vrot.slane %v383_v62, 2 }
 0x2e9   :  { %v366_v4 = vrot.slane %v365_v63, 1  ;;  %v379_v5 = vadd.f32 %v378_v1, %v377_v60 }
 0x2ea   :  { %v372_v6 = vrot.slane %v371_v2, 1  ;;  %v385_v7 = vadd.f32 %v384_v3, %v383_v62  ;;  %v966_v62 = vld [vmem:[%s1235_s5 + $0x10] sm:$0xff]  }
 0x2eb   :  { %v367_v8 = vadd.f32 %v366_v4, %v365_v63  ;;  %v380_v9 = vrot.slane %v379_v5, 1  ;;  %v967_v63 = vld [vmem:[%s1235_s5 + $0x18] sm:$0xff]  }
 0x2ec   :  { %v373_v10 = vadd.f32 %v372_v6, %v371_v2  ;;  %v386_v11 = vrot.slane %v385_v7, 1 }
 0x2ed   :  { %v381_v12 = vadd.f32 %v380_v9, %v379_v5  ;;  %v388_v13 = vmul.f32 0.125, %v367_v8 }
 0x2ee   :  { %v387_v14 = vadd.f32 %v386_v11, %v385_v7  ;;  %v389_v15 = vmul.f32 0.125, %v373_v10 }
 0x2ef   :  { %v390_v16 = vmul.f32 0.125, %v381_v12  ;;  %v392_v17 = vmul.f32 %v388_v13, %v388_v13 }
 0x2f0   :  { %v391_v18 = vmul.f32 0.125, %v387_v14  ;;  %v393_v19 = vmul.f32 %v389_v15, %v389_v15 }
 0x2f1   :  { %v394_v20 = vsub.f32 %v390_v16, %v392_v17 }
 0x2f2   :  { %v395_v21 = vsub.f32 %v391_v18, %v393_v19 }
 0x2f3   :  { %v396_v22 = vmax.f32 %v394_v20, 0.0 }
 0x2f4   :  { %v397_v23 = vmax.f32 %v395_v21, 0.0 }
 0x2f5   :  { %v402_v24 = vadd.f32 1e-05, %v396_v22 }
 0x2f6   :  { %v403_v25 = vadd.f32 1e-05, %v397_v23 }
 0x2f7   :  { %972 = vrsqrt.f32 %v402_v24 }
 0x2f8   :  { %974 = vrsqrt.f32 %v403_v25 }
 0x301   :  { %v973_v31 = vpop.eup %972 }
 0x302   :  { %v975_v33 = vpop.eup %974 }
 0x303   :  { %v408_v34 = vcombine.low %v973_v31, %v975_v33 }
 0x305   :  { %v415_v35 = vrot.slane %v408_v34, %v414_v32 }
 0x307   :  { %v422_v37 = vrot.slane %v415_v35, %v414_v32 }
 0x309   :  { %v424_v40 = vmul.f32 %v823_v36, %v422_v37 }
 0x30b   :  { %v429_v41 = vrot.slane %v424_v40, %v428_v38  ;;  %v433_v42 = vrot.slane %v424_v40, %v432_v39 }
 0x30d   :  { %v436_v43 = vmul.f32 %v429_v41, %v388_v13  ;;  %v437_v44 = vmul.f32 %v433_v42, %v389_v15  ;;  %v458_v45 = vmul.f32 %v433_v42, %v357_v50  ;;  %v457_v46 = vmul.f32 %v429_v41, %v1174_v47  ;;  %v964_v47 = vld [vmem:[%s1235_s5] sm:$0xff]   ;;  %v965_v50 = vld [vmem:[%s1235_s5 + $0x8] sm:$0xff]  }
 0x30e   :  { %903 = vmatpush3.bf16.msra.mxu0 %v964_v47 }
 0x30f   :  { %v440_v48 = vcombine.low %v436_v43, %v437_v44  ;;  %904 = vmatprep.subr.bf16.mxu0 %v984_v0 }
 0x311   :  { %v447_v49 = vrot.slane %v440_v48, %v414_v32 }
 0x312   :  { %905 = vmatpush3.bf16.msra.mxu0 %v965_v50  ;;  %v770_v50 = vld [vmem:[%s1232_s6 + $0x10] ss:$0 sm:$0xff] }
 0x313   :  { %v454_v52 = vrot.slane %v447_v49, %v414_v32  ;;  %906 = vmatprep.subr.bf16.mxu0 %v984_v0 }
 0x315   :  { %v456_v53 = vsub.f32 %v824_v51, %v454_v52 }
 0x316   :  { %907 = vmatpush3.bf16.msra.mxu0 %v966_v62 }
 0x317   :  { %v467_v54 = vrot.slane %v456_v53, %v432_v39  ;;  %v463_v55 = vrot.slane %v456_v53, %v428_v38  ;;  %908 = vmatprep.subr.bf16.mxu0 %v984_v0 }
 0x319   :  { %v471_v56 = vadd.f32 %v467_v54, %v458_v45  ;;  %v470_v57 = vadd.f32 %v463_v55, %v457_v46 }
 0x31a   :  { %909 = vmatpush3.bf16.msra.mxu0 %v967_v63 }
 0x31b   :  { %v473_v58 = vmax.f32 %v471_v56, 0.0  ;;  %v472_v59 = vmax.f32 %v470_v57, 0.0 }
 0x31d   :  { %v475_v60 = vpack.c.bf16 %v473_v58, %v473_v58  ;;  %v474_v61 = vpack.c.bf16 %v472_v59, %v472_v59 }
 0x31f   :  { %636 = vmatprep.mubr.bf16.mxu1 %v475_v60 }
 0x320   :  { %637 = vmatmul.mubr.bf16.vlgmr.msra.gmra.mrb[4].mxu1 %v474_v61 }
 0x3f3   :  { %v871_v1 = vpop.f32.mrb[4].mxu1 }
 0x3f4   :  { %v872_v2 = vpop.f32.mrb[5].mxu1 }
 0x3f5   :  { %v873_v3 = vadd.f32 %v872_v2, %v871_v1  ;;  %v874_v4 = vpop.f32.mrb[6].mxu1  ;;  %v771_v1 = vld [vmem:[%s1232_s6 + $0x11] ss:$0 sm:$0xff] }
 0x3f6   :  { %v875_v5 = vpop.f32.mrb[7].mxu1 }
 0x3f7   :  { %v644_v6 = vsel %vm89_vm2, %v873_v3, 0.0  ;;  %v651_v7 = vmul.f32 %v873_v3, %v873_v3 }
 0x3f8   :  { %v645_v8 = vrot.slane %v644_v6, 4 }
 0x3f9   :  { %v652_v9 = vsel %vm89_vm2, %v651_v7, 0.0 }
 0x3fa   :  { %v646_v10 = vadd.f32 %v645_v8, %v644_v6  ;;  %v653_v11 = vrot.slane %v652_v9, 4  ;;  %v780_v6 = vld [vmem:[%s1232_s6 + $0x12] ss:$0 sm:$0xff] }
 0x3fc   :  { %v647_v12 = vrot.slane %v646_v10, 2  ;;  %v654_v0 = vadd.f32 %v653_v11, %v652_v9 }
 0x3fe   :  { %v648_v13 = vadd.f32 %v647_v12, %v646_v10  ;;  %v655_v14 = vrot.slane %v654_v0, 2  ;;  %v781_v10 = vld [vmem:[%s1232_s6 + $0x13] ss:$0 sm:$0xff] }
 0x400   :  { %v649_v15 = vrot.slane %v648_v13, 1  ;;  %v656_v16 = vadd.f32 %v655_v14, %v654_v0 }
 0x402   :  { %v650_v17 = vadd.f32 %v649_v15, %v648_v13  ;;  %v657_v18 = vrot.slane %v656_v16, 1 }
 0x404   :  { %v658_v19 = vadd.f32 %v657_v18, %v656_v16  ;;  %v659_v20 = vmul.f32 0.125, %v650_v17 }
 0x406   :  { %v660_v21 = vmul.f32 0.125, %v658_v19  ;;  %v661_v22 = vmul.f32 %v659_v20, %v659_v20 }
 0x408   :  { %v662_v23 = vsub.f32 %v660_v21, %v661_v22 }
 0x40a   :  { %v663_v24 = vmax.f32 %v662_v23, 0.0 }
 0x40c   :  { %v666_v25 = vadd.f32 1e-05, %v663_v24 }
 0x40e   :  { %976 = vrsqrt.f32 %v666_v25 }
 0x418   :  { %v977_v27 = vpop.eup %976 }
 0x419   :  { %v668_v28 = vmul.f32 %v977_v27, %v664_v26 }
 0x41b   :  { %v669_v30 = vmul.f32 %v668_v28, %v659_v20  ;;  %v671_v32 = vmul.f32 %v873_v3, %v668_v28 }
 0x41d   :  { %v670_v31 = vsub.f32 %v665_v29, %v669_v30 }
 0x41f   :  { %v672_v33 = vadd.f32 %v671_v32, %v670_v31 }
 0x421   :  { %v673_v34 = vmax.f32 %v672_v33, 0.0 }
 0x423   :  { %v674_v35 = vpack.c.bf16 %v673_v34, %v673_v34 }
 0x425   :  { %911 = vmatmul.mubr.msk.bf16.vlgmr.msra.gmra.mrb[8].mxu0 %vm89_vm2, %v674_v35 }
 0x4f8   :  { %v744_v36 = vpop.f32.mrb[8].mxu0 }
 0x4f9   :  { %v750_v37 = vsel %vm45_vm1, %v744_v36, 0.0  ;;  %v757_v38 = vmul.f32 %v744_v36, %v744_v36  ;;  %v912_v39 = vpop.f32.mrb[9].mxu0 }
 0x4fa   :  { %v751_v40 = vrot.slane %v750_v37, 4  ;;  %v747_v41 = vpop.f32.mrb[10].mxu0 }
 0x4fb   :  { %v758_v42 = vsel %vm45_vm1, %v757_v38, 0.0  ;;  %v913_v43 = vpop.f32.mrb[11].mxu0 }
 0x4fc   :  { %v752_v44 = vadd.f32 %v751_v40, %v750_v37  ;;  %v759_v45 = vrot.slane %v758_v42, 4 }
 0x4fe   :  { %v753_v46 = vrot.slane %v752_v44, 2  ;;  %v760_v48 = vadd.f32 %v759_v45, %v758_v42 }
 0x500   :  { %v754_v49 = vadd.f32 %v753_v46, %v752_v44  ;;  %v761_v51 = vrot.slane %v760_v48, 2 }
 0x502   :  { %v755_v52 = vrot.slane %v754_v49, 1  ;;  %v762_v53 = vadd.f32 %v761_v51, %v760_v48 }
 0x504   :  { %v756_v54 = vadd.f32 %v755_v52, %v754_v49  ;;  %v763_v55 = vrot.slane %v762_v53, 1 }
 0x506   :  { %v764_v56 = vadd.f32 %v763_v55, %v762_v53  ;;  %v765_v57 = vmul.f32 0.125, %v756_v54 }
 0x508   :  { %v766_v58 = vmul.f32 0.125, %v764_v56  ;;  %v767_v59 = vmul.f32 %v765_v57, %v765_v57 }
 0x50a   :  { %v768_v60 = vsub.f32 %v766_v58, %v767_v59 }
 0x50c   :  { %v769_v61 = vmax.f32 %v768_v60, 0.0 }
 0x50e   :  { %v772_v47 = vadd.f32 1e-05, %v769_v61 }
 0x510   :  { %978 = vrsqrt.f32 %v772_v47 }
 0x51a   :  { %v979_v62 = vpop.eup %978 }
 0x51b   :  { %v774_v63 = vmul.f32 %v979_v62, %v770_v50 }
 0x51d   :  { %v775_v2 = vmul.f32 %v774_v63, %v765_v57  ;;  %v777_v3 = vmul.f32 %v774_v63, %v744_v36 }
 0x51f   :  { %v776_v4 = vsub.f32 %v771_v1, %v775_v2 }
 0x521   :  { %v778_v5 = vadd.f32 %v777_v3, %v776_v4 }
 0x523   :  { %v779_v7 = vmax.f32 %v778_v5, 0.0 }
 0x525   :  { %v782_v8 = vmul.f32 %v780_v6, %v779_v7 }
 0x527   :  { %v783_v9 = vsel %vm45_vm1, %v782_v8, 0.0 }
 0x528   :  { %784 = vadd.xlane.f32.xlu0 %v783_v9 }
 0x5b5   :  { %v785_v11 = vpop.xlane.xlu0 %784 }
 0x5b6   :  { %v786_v12 = vadd.f32 %v785_v11, %v781_v10 }
 0x5b8   :  { %v846_v0 = vmul.f32 -1.442695, %v786_v12 }
 0x5ba   :  { %980 = vpow2.f32 %v846_v0 }
 0x5c4   :  { %v981_v13 = vpop.eup %980 }
 0x5c5   :  { %v790_v14 = vadd.f32 1.0, %v981_v13 }
 0x5c7   :  { %982 = vrcp.f32 %v790_v14 }
 0x5d1   :  { %v983_v15 = vpop.eup %982 }
 0x5d2   :  { %794 = vst.msk [vmem:[%s1236_s7] sm:$0xff] %vm793_vm3, %v983_v15 }

</bundles_post_ra>
